<compile_context>
chip_gen: v5e
topology: v5e:2x2
jax: 0.10.0
libtpu: 0.0.40
codegen_flags: <defaults>
</compile_context>

<pallas_src>
import math
import functools

import jax
import jax.numpy as jnp
from jax.experimental import pallas as pl
from jax.experimental.pallas import tpu as pltpu

CFG = dict(
    vocab_size=64,
    context_length=16,
    emb_dim=32,
    n_heads=4,
    n_layers=2,
    drop_rate=0.0,     # dropout is identity
    qkv_bias=False,    # matches the reference default (no q/k/v bias)
)


# ----------------------------- kernel helpers -----------------------------

def _layernorm(x, scale, shift, eps=1e-5):
    # matches custom LayerNorm: biased variance, eps inside sqrt (f32 math)
    mean = jnp.mean(x, axis=-1, keepdims=True)
    var = jnp.mean((x - mean) ** 2, axis=-1, keepdims=True)
    return scale * ((x - mean) / jnp.sqrt(var + eps)) + shift


def _gelu(x):
    # tanh-approximation GELU used by the reference model (f32, EUP tanh)
    return 0.5 * x * (1.0 + jnp.tanh(
        jnp.sqrt(2.0 / jnp.pi) * (x + 0.044715 * x ** 3)))


# ----------------------------- fused Pallas kernel --------------------------

def gpt_kernel(x_ref, pvec_ref, wqkv_ref, wo_ref, wf1_ref, wf2_ref,
               fvec_ref, wout_ref, out_ref, x_sc, *, n_heads):
    """One grid step = one (batch element, layer). Activation (T, D) carried in
    a VMEM scratch across the layer axis; final LN + head on the last layer."""
    l = pl.program_id(1)                       # layer index (inner, arbitrary)
    T, D = x_sc.shape
    hd = D // n_heads
    scale = 1.0 / math.sqrt(hd)

    # Re-initialize the activation carry at the start of each batch block.
    @pl.when(l == 0)
    def _():
        x_sc[...] = x_ref[...]

    x = x_sc[...]                              # (T, D) f32

    # Packed per-layer small params: rows [ln1_s, ln1_b, ln2_s, ln2_b, bo,
    # bf2, bf1, 0], lane-padded to 4D.
    pv = pvec_ref[...]                         # (8, 4D) f32
    ln1_s, ln1_b = pv[0:1, :D], pv[1:2, :D]
    ln2_s, ln2_b = pv[2:3, :D], pv[3:4, :D]
    bo, bf2 = pv[4:5, :D], pv[5:6, :D]
    bf1 = pv[6:7, :4 * D]

    # Causal additive mask, generated in registers (no HBM/VMEM operand).
    row = jax.lax.broadcasted_iota(jnp.int32, (T, T), 0)
    col = jax.lax.broadcasted_iota(jnp.int32, (T, T), 1)
    neg = jnp.where(col <= row, 0.0, -1e9).astype(jnp.float32)

    # ---- attention sub-block (shortcut -> LN -> MHA -> +shortcut) ----
    xn = _layernorm(x, ln1_s, ln1_b)
    qkv = jnp.dot(xn.astype(jnp.bfloat16), wqkv_ref[...],
                  preferred_element_type=jnp.float32)          # (T, 3D)
    q, k, v = qkv[:, 0:D], qkv[:, D:2 * D], qkv[:, 2 * D:3 * D]

    ctx_parts = []
    for h in range(n_heads):                   # static unroll, tiny matmuls
        sl = slice(h * hd, (h + 1) * hd)
        s = jnp.einsum('qd,kd->qk', q[:, sl], k[:, sl],
                       preferred_element_type=jnp.float32) * scale + neg
        m = jnp.max(s, axis=-1, keepdims=True)
        p = jnp.exp(s - m)                                     # f32, EUP
        a = p * pl.reciprocal(jnp.sum(p, axis=-1, keepdims=True), approx=True)
        ctx_parts.append(jnp.dot(a, v[:, sl],
                                 preferred_element_type=jnp.float32))
    ctx = jnp.concatenate(ctx_parts, axis=-1)                  # (T, D) lane-dense
    att = jnp.dot(ctx.astype(jnp.bfloat16), wo_ref[...],
                  preferred_element_type=jnp.float32) + bo
    x = x + att                                                # dropout = id

    # ---- feed-forward sub-block (shortcut -> LN -> MLP -> +shortcut) ----
    xn2 = _layernorm(x, ln2_s, ln2_b)
    h1 = _gelu(jnp.dot(xn2.astype(jnp.bfloat16), wf1_ref[...],
                       preferred_element_type=jnp.float32) + bf1)
    x = x + jnp.dot(h1.astype(jnp.bfloat16), wf2_ref[...],
                    preferred_element_type=jnp.float32) + bf2

    x_sc[...] = x                              # carry to next layer

    # ---- final LayerNorm + lane-dense unembedding on the last layer ----
    @pl.when(l == pl.num_programs(1) - 1)
    def _():
        fv = fvec_ref[...]                     # (2, D): [fn_s; fn_b]
        xf = _layernorm(x, fv[0:1, :], fv[1:2, :])
        out_ref[...] = jnp.dot(xf.astype(jnp.bfloat16), wout_ref[...],
                               preferred_element_type=jnp.float32)


# ----------------------------- weight repacking ------------------------------

def _kernel_weights(params):
    """Repack canonical per-block weights into layer-stacked, lane-dense arrays
    consumed by the kernel (pure layout plumbing, outside the kernel)."""
    blocks = params["blocks"]
    D = blocks[0]["wq"].shape[0]
    P = 4 * D

    # QKV packed (L, D, 3D): columns [0:D]=Q, [D:2D]=K, [2D:3D]=V.
    wqkv = jnp.stack([jnp.concatenate([b["wq"], b["wk"], b["wv"]], axis=1)
                      for b in blocks]).astype(jnp.bfloat16)
    wo = jnp.stack([b["wo"] for b in blocks]).astype(jnp.bfloat16)
    wf1 = jnp.stack([b["wf1"] for b in blocks]).astype(jnp.bfloat16)
    wf2 = jnp.stack([b["wf2"] for b in blocks]).astype(jnp.bfloat16)

    def pad_d(vec):                            # (1, D) -> (P,)
        return jnp.pad(vec.reshape(-1), (0, P - D))

    pvec = jnp.stack([
        jnp.stack([pad_d(b["ln1_s"]), pad_d(b["ln1_b"]),
                   pad_d(b["ln2_s"]), pad_d(b["ln2_b"]),
                   pad_d(b["bo"]), pad_d(b["bf2"]),
                   b["bf1"].reshape(-1),
                   jnp.zeros((P,), jnp.float32)])
        for b in blocks]).astype(jnp.float32)                  # (L, 8, P)

    fvec = jnp.concatenate([params["fn_s"], params["fn_b"]], axis=0)  # (2, D)
    return wqkv, wo, wf1, wf2, pvec, fvec.astype(jnp.float32)


def _padded_tile_bytes(shape, dtype):
    lead = 1
    for s in shape[:-2]:
        lead *= s
    r = shape[-2] if len(shape) > 1 else 1
    c = shape[-1]
    rp = ((r + 7) // 8) * 8
    cp = ((c + 127) // 128) * 128
    return lead * rp * cp * jnp.dtype(dtype).itemsize


# ----------------------------- wrapper --------------------------------------

def gpt_forward(in_idx, params):
    B, T = in_idx.shape
    D = params["tok_emb"].shape[1]
    H = CFG["n_heads"]
    L = len(params["blocks"])
    V = params["out_w"].shape[1]
    Vp = ((V + 127) // 128) * 128
    P = 4 * D

    # TODO(synk): token/position embedding gathers stay in plain JAX (data-
    # dependent HBM gather); could be folded in via PrefetchScalarGridSpec.
    tok = params["tok_emb"][in_idx]                       # (B, T, D)
    pos = params["pos_emb"][:T]                           # (T, D)
    x = (tok + pos[None, :, :]).astype(jnp.float32)       # drop_emb is identity

    wqkv, wo, wf1, wf2, pvec, fvec = _kernel_weights(params)

    # Lane-dense head: pad vocab dim up to a multiple of 128, slice after.
    wout = params["out_w"]
    if Vp != V:
        wout = jnp.pad(wout, ((0, 0), (0, Vp - V)))
    wout = wout.astype(jnp.bfloat16)

    # Scoped-VMEM budget: padded block bytes x2 (double buffering) + headroom.
    blk = [((T, D), jnp.float32), ((8, P), jnp.float32),
           ((D, 3 * D), jnp.bfloat16), ((D, D), jnp.bfloat16),
           ((D, 4 * D), jnp.bfloat16), ((4 * D, D), jnp.bfloat16),
           ((2, D), jnp.float32), ((D, Vp), jnp.bfloat16),
           ((T, Vp), jnp.float32), ((T, D), jnp.float32)]
    vmem_budget = 2 * sum(_padded_tile_bytes(s, d) for s, d in blk) + (2 << 20)

    kern = functools.partial(gpt_kernel, n_heads=H)

    out = pl.pallas_call(
        kern,
        out_shape=jax.ShapeDtypeStruct((B, T, Vp), jnp.float32),
        grid=(B, L),                                     # batch parallel, layers arbitrary
        in_specs=[
            pl.BlockSpec((None, T, D), lambda b, l: (b, 0, 0)),       # x
            pl.BlockSpec((None, 8, P), lambda b, l: (l, 0, 0)),       # packed per-layer vecs
            pl.BlockSpec((None, D, 3 * D), lambda b, l: (l, 0, 0)),   # wqkv
            pl.BlockSpec((None, D, D), lambda b, l: (l, 0, 0)),       # wo
            pl.BlockSpec((None, D, 4 * D), lambda b, l: (l, 0, 0)),   # wf1
            pl.BlockSpec((None, 4 * D, D), lambda b, l: (l, 0, 0)),   # wf2
            pl.BlockSpec((2, D), lambda b, l: (0, 0)),                # final LN params
            pl.BlockSpec((D, Vp), lambda b, l: (0, 0)),               # out head
        ],
        out_specs=pl.BlockSpec((None, T, Vp), lambda b, l: (b, 0, 0)),
        scratch_shapes=[pltpu.VMEM((T, D), jnp.float32)],             # activation carry
        compiler_params=pltpu.CompilerParams(
            dimension_semantics=("parallel", "arbitrary"),
            vmem_limit_bytes=int(vmem_budget)),
    )(x, pvec, wqkv, wo, wf1, wf2, fvec, wout)

    return out[:, :, :V]


# ----------------------------- reference (pure JAX, f32) ---------------------

def ref_forward(in_idx, params):
    n_heads = CFG["n_heads"]
    tok = params["tok_emb"][in_idx]
    pos = params["pos_emb"][: in_idx.shape[1]]
    x = tok + pos[None]
    for blk in params["blocks"]:
        xn = _layernorm(x, blk["ln1_s"], blk["ln1_b"])
        q = xn @ blk["wq"]
        k = xn @ blk["wk"]
        v = xn @ blk["wv"]
        B, T, D = q.shape
        hd = D // n_heads
        qh = q.reshape(B, T, n_heads, hd).transpose(0, 2, 1, 3)
        kh = k.reshape(B, T, n_heads, hd).transpose(0, 2, 1, 3)
        vh = v.reshape(B, T, n_heads, hd).transpose(0, 2, 1, 3)
        s = jnp.einsum("bhqd,bhkd->bhqk", qh, kh)
        mask = jnp.tril(jnp.ones((T, T), bool))
        s = jnp.where(mask, s, -jnp.inf)
        a = jax.nn.softmax(s / math.sqrt(hd), axis=-1)
        ctx = jnp.einsum("bhqk,bhkd->bhqd", a, vh)
        ctx = ctx.transpose(0, 2, 1, 3).reshape(B, T, D)
        x = x + (ctx @ blk["wo"] + blk["bo"])
        xn2 = _layernorm(x, blk["ln2_s"], blk["ln2_b"])
        h1 = _gelu(xn2 @ blk["wf1"] + blk["bf1"])
        x = x + (h1 @ blk["wf2"] + blk["bf2"])
    xn = _layernorm(x, params["fn_s"], params["fn_b"])
    return xn @ params["out_w"]


# ----------------------------- params -------------------------------------

def init_params(cfg, key):
    D, V, C = cfg["emb_dim"], cfg["vocab_size"], cfg["context_length"]
    keys = iter(jax.random.split(key, 8 + 16 * cfg["n_layers"]))

    def nrm(shape, scale=0.02):
        return scale * jax.random.normal(next(keys), shape, jnp.float32)

    params = dict(
        tok_emb=nrm((V, D)),
        pos_emb=nrm((C, D)),
        fn_s=jnp.ones((1, D), jnp.float32),
        fn_b=jnp.zeros((1, D), jnp.float32),
        out_w=nrm((D, V)),
        blocks=[],
    )
    for _ in range(cfg["n_layers"]):
        params["blocks"].append(dict(
            ln1_s=jnp.ones((1, D), jnp.float32),
            ln1_b=jnp.zeros((1, D), jnp.float32),
            wq=nrm((D, D)), wk=nrm((D, D)), wv=nrm((D, D)),
            wo=nrm((D, D)), bo=nrm((1, D)),
            ln2_s=jnp.ones((1, D), jnp.float32),
            ln2_b=jnp.zeros((1, D), jnp.float32),
            wf1=nrm((D, 4 * D)), bf1=nrm((1, 4 * D)),
            wf2=nrm((4 * D, D)), bf2=nrm((1, D)),
        ))
    return params


# ----------------------------- main ----------------------------------------

if __name__ == "__main__":
    key = jax.random.PRNGKey(0)
    k_idx, k_par = jax.random.split(key)

    B, T = 2, 8
    in_idx = jax.random.randint(k_idx, (B, T), 0, CFG["vocab_size"], jnp.int32)
    params = init_params(CFG, k_par)

    logits = jax.block_until_ready(gpt_forward(in_idx, params))
    ref = jax.block_until_ready(ref_forward(in_idx, params))

    assert logits.shape == (B, T, CFG["vocab_size"])
    assert jnp.all(jnp.isfinite(logits))
    # Tolerance accounts for bf16 matmul operands (f32 accumulate) and the
    # approximate EUP reciprocal in the softmax; structural errors would be
    # orders of magnitude larger than this.
    assert jnp.allclose(logits, ref, rtol=3e-2, atol=5e-3), "mismatch vs reference"

    print("KERNEL_OK")
</pallas_src>

<mosaic_0001>
module attributes {stable_mosaic.version = 11 : i64} {
  func.func @gpt_kernel(%arg0: i32, %arg1: i32, %arg2: memref<1x8x32xf32, #tpu.memory_space<vmem>>, %arg3: memref<1x8x128xf32, #tpu.memory_space<vmem>>, %arg4: memref<1x32x96xbf16, #tpu.memory_space<vmem>>, %arg5: memref<1x32x32xbf16, #tpu.memory_space<vmem>>, %arg6: memref<1x32x128xbf16, #tpu.memory_space<vmem>>, %arg7: memref<1x128x32xbf16, #tpu.memory_space<vmem>>, %arg8: memref<2x32xf32, #tpu.memory_space<vmem>>, %arg9: memref<32x128xbf16, #tpu.memory_space<vmem>>, %arg10: memref<1x8x128xf32, #tpu.memory_space<vmem>>, %arg11: memref<8x32xf32, #tpu.memory_space<vmem>>) attributes {dimension_semantics = [#tpu.dimension_semantics<parallel>, #tpu.dimension_semantics<arbitrary>], iteration_bounds = array<i64: 2, 2>, scalar_prefetch = 0 : i64, scratch_operands = 1 : i64, tpu.core_type = #tpu.core_type<tc>, window_params = [{transform_indices = @transform_0, window_bounds = array<i64: 1, 8, 32>}, {transform_indices = @transform_1, window_bounds = array<i64: 1, 8, 128>}, {transform_indices = @transform_2, window_bounds = array<i64: 1, 32, 96>}, {transform_indices = @transform_3, window_bounds = array<i64: 1, 32, 32>}, {transform_indices = @transform_4, window_bounds = array<i64: 1, 32, 128>}, {transform_indices = @transform_5, window_bounds = array<i64: 1, 128, 32>}, {pipeline_mode = #tpu.pipeline_mode<synchronous>, transform_indices = @transform_6, window_bounds = array<i64: 2, 32>}, {pipeline_mode = #tpu.pipeline_mode<synchronous>, transform_indices = @transform_7, window_bounds = array<i64: 32, 128>}, {transform_indices = @transform_8, window_bounds = array<i64: 1, 8, 128>}]} {
    %c0_i32 = arith.constant 0 : i32
    %0 = arith.cmpi eq, %arg1, %c0_i32 : i32
    %1 = arith.extui %0 : i1 to i32
    %c0_i32_0 = arith.constant 0 : i32
    %2 = arith.cmpi ne, %1, %c0_i32_0 : i32
    scf.if %2 {
      %c0_59 = arith.constant 0 : index
      %c0_60 = arith.constant 0 : index
      %c0_61 = arith.constant 0 : index
      %181 = vector.load %arg2[%c0_59, %c0_60, %c0_61] : memref<1x8x32xf32, #tpu.memory_space<vmem>>, vector<1x8x32xf32>
      %182 = vector.shape_cast %181 : vector<1x8x32xf32> to vector<8x32xf32>
      %c0_62 = arith.constant 0 : index
      %c0_63 = arith.constant 0 : index
      %183 = vector.load %arg11[%c0_62, %c0_63] : memref<8x32xf32, #tpu.memory_space<vmem>>, vector<8x32xf32>
      tpu.vector_store %arg11[%c0_62, %c0_63], %182 {strides = array<i32>} : memref<8x32xf32, #tpu.memory_space<vmem>>, vector<8x32xf32>,
    } else {
    }
    %c0 = arith.constant 0 : index
    %c0_1 = arith.constant 0 : index
    %3 = vector.load %arg11[%c0, %c0_1] : memref<8x32xf32, #tpu.memory_space<vmem>>, vector<8x32xf32>
    %c0_2 = arith.constant 0 : index
    %c0_3 = arith.constant 0 : index
    %c0_4 = arith.constant 0 : index
    %4 = vector.load %arg3[%c0_2, %c0_3, %c0_4] : memref<1x8x128xf32, #tpu.memory_space<vmem>>, vector<1x8x128xf32>
    %5 = vector.shape_cast %4 : vector<1x8x128xf32> to vector<8x128xf32>
    %6 = vector.extract_strided_slice %5 {offsets = [0, 0], sizes = [1, 32], strides = [1, 1]} : vector<8x128xf32> to vector<1x32xf32>
    %7 = vector.extract_strided_slice %5 {offsets = [1, 0], sizes = [1, 32], strides = [1, 1]} : vector<8x128xf32> to vector<1x32xf32>
    %8 = vector.extract_strided_slice %5 {offsets = [2, 0], sizes = [1, 32], strides = [1, 1]} : vector<8x128xf32> to vector<1x32xf32>
    %9 = vector.extract_strided_slice %5 {offsets = [3, 0], sizes = [1, 32], strides = [1, 1]} : vector<8x128xf32> to vector<1x32xf32>
    %10 = vector.extract_strided_slice %5 {offsets = [4, 0], sizes = [1, 32], strides = [1, 1]} : vector<8x128xf32> to vector<1x32xf32>
    %11 = vector.extract_strided_slice %5 {offsets = [5, 0], sizes = [1, 32], strides = [1, 1]} : vector<8x128xf32> to vector<1x32xf32>
    %12 = vector.extract_strided_slice %5 {offsets = [6, 0], sizes = [1, 128], strides = [1, 1]} : vector<8x128xf32> to vector<1x128xf32>
    %13 = tpu.iota {dimensions = array<i32: 0>} : vector<8x8xi32>
    %14 = tpu.iota {dimensions = array<i32: 1>} : vector<8x8xi32>
    %15 = arith.cmpi sle, %14, %13 : vector<8x8xi32>
    %cst = arith.constant 0.000000e+00 : f32
    %cst_5 = arith.constant -1.000000e+09 : f32
    %16 = vector.broadcast %cst : f32 to vector<8x8xf32>
    %17 = vector.broadcast %cst_5 : f32 to vector<8x8xf32>
    %18 = arith.select %15, %16, %17 : vector<8x8xi1>, vector<8x8xf32>
    %cst_6 = arith.constant dense<0.000000e+00> : vector<8xf32>
    %19 = vector.multi_reduction <add>, %3, %cst_6 [1] : vector<8x32xf32> to vector<8xf32>
    %20 = vector.shape_cast %19 : vector<8xf32> to vector<8x1xf32>
    %cst_7 = arith.constant 3.200000e+01 : f32
    %21 = vector.broadcast %cst_7 : f32 to vector<8x1xf32>
    %22 = arith.divf %20, %21 : vector<8x1xf32>
    %23 = vector.broadcast %22 : vector<8x1xf32> to vector<8x32xf32>
    %24 = arith.subf %3, %23 : vector<8x32xf32>
    %25 = arith.mulf %24, %24 : vector<8x32xf32>
    %cst_8 = arith.constant dense<0.000000e+00> : vector<8xf32>
    %26 = vector.multi_reduction <add>, %25, %cst_8 [1] : vector<8x32xf32> to vector<8xf32>
    %27 = vector.shape_cast %26 : vector<8xf32> to vector<8x1xf32>
    %cst_9 = arith.constant 3.200000e+01 : f32
    %28 = vector.broadcast %cst_9 : f32 to vector<8x1xf32>
    %29 = arith.divf %27, %28 : vector<8x1xf32>
    %30 = vector.broadcast %22 : vector<8x1xf32> to vector<8x32xf32>
    %31 = arith.subf %3, %30 : vector<8x32xf32>
    %cst_10 = arith.constant 9.99999974E-6 : f32
    %32 = vector.broadcast %cst_10 : f32 to vector<8x1xf32>
    %33 = arith.addf %29, %32 : vector<8x1xf32>
    %34 = math.sqrt %33 : vector<8x1xf32>
    %35 = vector.broadcast %34 : vector<8x1xf32> to vector<8x32xf32>
    %36 = arith.divf %31, %35 : vector<8x32xf32>
    %37 = vector.broadcast %6 : vector<1x32xf32> to vector<8x32xf32>
    %38 = arith.mulf %37, %36 : vector<8x32xf32>
    %39 = vector.broadcast %7 : vector<1x32xf32> to vector<8x32xf32>
    %40 = arith.addf %38, %39 : vector<8x32xf32>
    %41 = arith.truncf %40 : vector<8x32xf32> to vector<8x32xbf16>
    %c0_11 = arith.constant 0 : index
    %c0_12 = arith.constant 0 : index
    %c0_13 = arith.constant 0 : index
    %42 = vector.load %arg4[%c0_11, %c0_12, %c0_13] : memref<1x32x96xbf16, #tpu.memory_space<vmem>>, vector<1x32x96xbf16>
    %43 = vector.shape_cast %42 : vector<1x32x96xbf16> to vector<32x96xbf16>
    %cst_14 = arith.constant dense<0.000000e+00> : vector<8x96xf32>
    %44 = tpu.matmul %41, %43, %cst_14 {dimension_numbers = #tpu.dot_dimension_numbers<[1], [0], [0], [1], [0, 0, 1, 1], [], []>} : vector<8x32xbf16>, vector<32x96xbf16>, vector<8x96xf32> -> vector<8x96xf32>
    %45 = vector.extract_strided_slice %44 {offsets = [0, 0], sizes = [8, 32], strides = [1, 1]} : vector<8x96xf32> to vector<8x32xf32>
    %46 = vector.extract_strided_slice %44 {offsets = [0, 32], sizes = [8, 32], strides = [1, 1]} : vector<8x96xf32> to vector<8x32xf32>
    %47 = vector.extract_strided_slice %44 {offsets = [0, 64], sizes = [8, 32], strides = [1, 1]} : vector<8x96xf32> to vector<8x32xf32>
    %48 = vector.extract_strided_slice %45 {offsets = [0, 0], sizes = [8, 8], strides = [1, 1]} : vector<8x32xf32> to vector<8x8xf32>
    %49 = vector.extract_strided_slice %46 {offsets = [0, 0], sizes = [8, 8], strides = [1, 1]} : vector<8x32xf32> to vector<8x8xf32>
    "tpu.trace_start"() <{level = 10 : i32, message = "qd,kd->qk"}> : () -> ()
    %cst_15 = arith.constant dense<0.000000e+00> : vector<8x8xf32>
    %50 = tpu.matmul %48, %49, %cst_15 {dimension_numbers = #tpu.dot_dimension_numbers<[1], [1], [0], [0], [0, 0, 1, 0], [], []>} : vector<8x8xf32>, vector<8x8xf32>, vector<8x8xf32> -> vector<8x8xf32>
    "tpu.trace_stop"() : () -> ()
    %cst_16 = arith.constant 0.353553385 : f32
    %51 = vector.broadcast %cst_16 : f32 to vector<8x8xf32>
    %52 = arith.mulf %50, %51 : vector<8x8xf32>
    %53 = arith.addf %52, %18 : vector<8x8xf32>
    %cst_17 = arith.constant dense<0xFF800000> : vector<8xf32>
    %54 = vector.multi_reduction <maximumf>, %53, %cst_17 [1] : vector<8x8xf32> to vector<8xf32>
    %55 = vector.shape_cast %54 : vector<8xf32> to vector<8x1xf32>
    %56 = vector.broadcast %55 : vector<8x1xf32> to vector<8x8xf32>
    %57 = arith.subf %53, %56 : vector<8x8xf32>
    %58 = math.exp %57 : vector<8x8xf32>
    %cst_18 = arith.constant dense<0.000000e+00> : vector<8xf32>
    %59 = vector.multi_reduction <add>, %58, %cst_18 [1] : vector<8x8xf32> to vector<8xf32>
    %60 = vector.shape_cast %59 : vector<8xf32> to vector<8x1xf32>
    %61 = tpu.reciprocal %60 {approx = true} : vector<8x1xf32> -> vector<8x1xf32>
    %62 = vector.broadcast %61 : vector<8x1xf32> to vector<8x8xf32>
    %63 = arith.mulf %58, %62 : vector<8x8xf32>
    %64 = vector.extract_strided_slice %47 {offsets = [0, 0], sizes = [8, 8], strides = [1, 1]} : vector<8x32xf32> to vector<8x8xf32>
    %cst_19 = arith.constant dense<0.000000e+00> : vector<8x8xf32>
    %65 = tpu.matmul %63, %64, %cst_19 {dimension_numbers = #tpu.dot_dimension_numbers<[1], [0], [0], [1], [0, 0, 1, 1], [], []>} : vector<8x8xf32>, vector<8x8xf32>, vector<8x8xf32> -> vector<8x8xf32>
    %66 = vector.extract_strided_slice %45 {offsets = [0, 8], sizes = [8, 8], strides = [1, 1]} : vector<8x32xf32> to vector<8x8xf32>
    %67 = vector.extract_strided_slice %46 {offsets = [0, 8], sizes = [8, 8], strides = [1, 1]} : vector<8x32xf32> to vector<8x8xf32>
    "tpu.trace_start"() <{level = 10 : i32, message = "qd,kd->qk"}> : () -> ()
    %cst_20 = arith.constant dense<0.000000e+00> : vector<8x8xf32>
    %68 = tpu.matmul %66, %67, %cst_20 {dimension_numbers = #tpu.dot_dimension_numbers<[1], [1], [0], [0], [0, 0, 1, 0], [], []>} : vector<8x8xf32>, vector<8x8xf32>, vector<8x8xf32> -> vector<8x8xf32>
    "tpu.trace_stop"() : () -> ()
    %cst_21 = arith.constant 0.353553385 : f32
    %69 = vector.broadcast %cst_21 : f32 to vector<8x8xf32>
    %70 = arith.mulf %68, %69 : vector<8x8xf32>
    %71 = arith.addf %70, %18 : vector<8x8xf32>
    %cst_22 = arith.constant dense<0xFF800000> : vector<8xf32>
    %72 = vector.multi_reduction <maximumf>, %71, %cst_22 [1] : vector<8x8xf32> to vector<8xf32>
    %73 = vector.shape_cast %72 : vector<8xf32> to vector<8x1xf32>
    %74 = vector.broadcast %73 : vector<8x1xf32> to vector<8x8xf32>
    %75 = arith.subf %71, %74 : vector<8x8xf32>
    %76 = math.exp %75 : vector<8x8xf32>
    %cst_23 = arith.constant dense<0.000000e+00> : vector<8xf32>
    %77 = vector.multi_reduction <add>, %76, %cst_23 [1] : vector<8x8xf32> to vector<8xf32>
    %78 = vector.shape_cast %77 : vector<8xf32> to vector<8x1xf32>
    %79 = tpu.reciprocal %78 {approx = true} : vector<8x1xf32> -> vector<8x1xf32>
    %80 = vector.broadcast %79 : vector<8x1xf32> to vector<8x8xf32>
    %81 = arith.mulf %76, %80 : vector<8x8xf32>
    %82 = vector.extract_strided_slice %47 {offsets = [0, 8], sizes = [8, 8], strides = [1, 1]} : vector<8x32xf32> to vector<8x8xf32>
    %cst_24 = arith.constant dense<0.000000e+00> : vector<8x8xf32>
    %83 = tpu.matmul %81, %82, %cst_24 {dimension_numbers = #tpu.dot_dimension_numbers<[1], [0], [0], [1], [0, 0, 1, 1], [], []>} : vector<8x8xf32>, vector<8x8xf32>, vector<8x8xf32> -> vector<8x8xf32>
    %84 = vector.extract_strided_slice %45 {offsets = [0, 16], sizes = [8, 8], strides = [1, 1]} : vector<8x32xf32> to vector<8x8xf32>
    %85 = vector.extract_strided_slice %46 {offsets = [0, 16], sizes = [8, 8], strides = [1, 1]} : vector<8x32xf32> to vector<8x8xf32>
    "tpu.trace_start"() <{level = 10 : i32, message = "qd,kd->qk"}> : () -> ()
    %cst_25 = arith.constant dense<0.000000e+00> : vector<8x8xf32>
    %86 = tpu.matmul %84, %85, %cst_25 {dimension_numbers = #tpu.dot_dimension_numbers<[1], [1], [0], [0], [0, 0, 1, 0], [], []>} : vector<8x8xf32>, vector<8x8xf32>, vector<8x8xf32> -> vector<8x8xf32>
    "tpu.trace_stop"() : () -> ()
    %cst_26 = arith.constant 0.353553385 : f32
    %87 = vector.broadcast %cst_26 : f32 to vector<8x8xf32>
    %88 = arith.mulf %86, %87 : vector<8x8xf32>
    %89 = arith.addf %88, %18 : vector<8x8xf32>
    %cst_27 = arith.constant dense<0xFF800000> : vector<8xf32>
    %90 = vector.multi_reduction <maximumf>, %89, %cst_27 [1] : vector<8x8xf32> to vector<8xf32>
    %91 = vector.shape_cast %90 : vector<8xf32> to vector<8x1xf32>
    %92 = vector.broadcast %91 : vector<8x1xf32> to vector<8x8xf32>
    %93 = arith.subf %89, %92 : vector<8x8xf32>
    %94 = math.exp %93 : vector<8x8xf32>
    %cst_28 = arith.constant dense<0.000000e+00> : vector<8xf32>
    %95 = vector.multi_reduction <add>, %94, %cst_28 [1] : vector<8x8xf32> to vector<8xf32>
    %96 = vector.shape_cast %95 : vector<8xf32> to vector<8x1xf32>
    %97 = tpu.reciprocal %96 {approx = true} : vector<8x1xf32> -> vector<8x1xf32>
    %98 = vector.broadcast %97 : vector<8x1xf32> to vector<8x8xf32>
    %99 = arith.mulf %94, %98 : vector<8x8xf32>
    %100 = vector.extract_strided_slice %47 {offsets = [0, 16], sizes = [8, 8], strides = [1, 1]} : vector<8x32xf32> to vector<8x8xf32>
    %cst_29 = arith.constant dense<0.000000e+00> : vector<8x8xf32>
    %101 = tpu.matmul %99, %100, %cst_29 {dimension_numbers = #tpu.dot_dimension_numbers<[1], [0], [0], [1], [0, 0, 1, 1], [], []>} : vector<8x8xf32>, vector<8x8xf32>, vector<8x8xf32> -> vector<8x8xf32>
    %102 = vector.extract_strided_slice %45 {offsets = [0, 24], sizes = [8, 8], strides = [1, 1]} : vector<8x32xf32> to vector<8x8xf32>
    %103 = vector.extract_strided_slice %46 {offsets = [0, 24], sizes = [8, 8], strides = [1, 1]} : vector<8x32xf32> to vector<8x8xf32>
    "tpu.trace_start"() <{level = 10 : i32, message = "qd,kd->qk"}> : () -> ()
    %cst_30 = arith.constant dense<0.000000e+00> : vector<8x8xf32>
    %104 = tpu.matmul %102, %103, %cst_30 {dimension_numbers = #tpu.dot_dimension_numbers<[1], [1], [0], [0], [0, 0, 1, 0], [], []>} : vector<8x8xf32>, vector<8x8xf32>, vector<8x8xf32> -> vector<8x8xf32>
    "tpu.trace_stop"() : () -> ()
    %cst_31 = arith.constant 0.353553385 : f32
    %105 = vector.broadcast %cst_31 : f32 to vector<8x8xf32>
    %106 = arith.mulf %104, %105 : vector<8x8xf32>
    %107 = arith.addf %106, %18 : vector<8x8xf32>
    %cst_32 = arith.constant dense<0xFF800000> : vector<8xf32>
    %108 = vector.multi_reduction <maximumf>, %107, %cst_32 [1] : vector<8x8xf32> to vector<8xf32>
    %109 = vector.shape_cast %108 : vector<8xf32> to vector<8x1xf32>
    %110 = vector.broadcast %109 : vector<8x1xf32> to vector<8x8xf32>
    %111 = arith.subf %107, %110 : vector<8x8xf32>
    %112 = math.exp %111 : vector<8x8xf32>
    %cst_33 = arith.constant dense<0.000000e+00> : vector<8xf32>
    %113 = vector.multi_reduction <add>, %112, %cst_33 [1] : vector<8x8xf32> to vector<8xf32>
    %114 = vector.shape_cast %113 : vector<8xf32> to vector<8x1xf32>
    %115 = tpu.reciprocal %114 {approx = true} : vector<8x1xf32> -> vector<8x1xf32>
    %116 = vector.broadcast %115 : vector<8x1xf32> to vector<8x8xf32>
    %117 = arith.mulf %112, %116 : vector<8x8xf32>
    %118 = vector.extract_strided_slice %47 {offsets = [0, 24], sizes = [8, 8], strides = [1, 1]} : vector<8x32xf32> to vector<8x8xf32>
    %cst_34 = arith.constant dense<0.000000e+00> : vector<8x8xf32>
    %119 = tpu.matmul %117, %118, %cst_34 {dimension_numbers = #tpu.dot_dimension_numbers<[1], [0], [0], [1], [0, 0, 1, 1], [], []>} : vector<8x8xf32>, vector<8x8xf32>, vector<8x8xf32> -> vector<8x8xf32>
    %120 = tpu.concatenate %65, %83, %101, %119 in 1 : vector<8x8xf32>, vector<8x8xf32>, vector<8x8xf32>, vector<8x8xf32> -> vector<8x32xf32>
    %121 = arith.truncf %120 : vector<8x32xf32> to vector<8x32xbf16>
    %c0_35 = arith.constant 0 : index
    %c0_36 = arith.constant 0 : index
    %c0_37 = arith.constant 0 : index
    %122 = vector.load %arg5[%c0_35, %c0_36, %c0_37] : memref<1x32x32xbf16, #tpu.memory_space<vmem>>, vector<1x32x32xbf16>
    %123 = vector.shape_cast %122 : vector<1x32x32xbf16> to vector<32x32xbf16>
    %cst_38 = arith.constant dense<0.000000e+00> : vector<8x32xf32>
    %124 = tpu.matmul %121, %123, %cst_38 {dimension_numbers = #tpu.dot_dimension_numbers<[1], [0], [0], [1], [0, 0, 1, 1], [], []>} : vector<8x32xbf16>, vector<32x32xbf16>, vector<8x32xf32> -> vector<8x32xf32>
    %125 = vector.broadcast %10 : vector<1x32xf32> to vector<8x32xf32>
    %126 = arith.addf %124, %125 : vector<8x32xf32>
    %127 = arith.addf %3, %126 : vector<8x32xf32>
    %cst_39 = arith.constant dense<0.000000e+00> : vector<8xf32>
    %128 = vector.multi_reduction <add>, %127, %cst_39 [1] : vector<8x32xf32> to vector<8xf32>
    %129 = vector.shape_cast %128 : vector<8xf32> to vector<8x1xf32>
    %cst_40 = arith.constant 3.200000e+01 : f32
    %130 = vector.broadcast %cst_40 : f32 to vector<8x1xf32>
    %131 = arith.divf %129, %130 : vector<8x1xf32>
    %132 = vector.broadcast %131 : vector<8x1xf32> to vector<8x32xf32>
    %133 = arith.subf %127, %132 : vector<8x32xf32>
    %134 = arith.mulf %133, %133 : vector<8x32xf32>
    %cst_41 = arith.constant dense<0.000000e+00> : vector<8xf32>
    %135 = vector.multi_reduction <add>, %134, %cst_41 [1] : vector<8x32xf32> to vector<8xf32>
    %136 = vector.shape_cast %135 : vector<8xf32> to vector<8x1xf32>
    %cst_42 = arith.constant 3.200000e+01 : f32
    %137 = vector.broadcast %cst_42 : f32 to vector<8x1xf32>
    %138 = arith.divf %136, %137 : vector<8x1xf32>
    %139 = vector.broadcast %131 : vector<8x1xf32> to vector<8x32xf32>
    %140 = arith.subf %127, %139 : vector<8x32xf32>
    %cst_43 = arith.constant 9.99999974E-6 : f32
    %141 = vector.broadcast %cst_43 : f32 to vector<8x1xf32>
    %142 = arith.addf %138, %141 : vector<8x1xf32>
    %143 = math.sqrt %142 : vector<8x1xf32>
    %144 = vector.broadcast %143 : vector<8x1xf32> to vector<8x32xf32>
    %145 = arith.divf %140, %144 : vector<8x32xf32>
    %146 = vector.broadcast %8 : vector<1x32xf32> to vector<8x32xf32>
    %147 = arith.mulf %146, %145 : vector<8x32xf32>
    %148 = vector.broadcast %9 : vector<1x32xf32> to vector<8x32xf32>
    %149 = arith.addf %147, %148 : vector<8x32xf32>
    %150 = arith.truncf %149 : vector<8x32xf32> to vector<8x32xbf16>
    %c0_44 = arith.constant 0 : index
    %c0_45 = arith.constant 0 : index
    %c0_46 = arith.constant 0 : index
    %151 = vector.load %arg6[%c0_44, %c0_45, %c0_46] : memref<1x32x128xbf16, #tpu.memory_space<vmem>>, vector<1x32x128xbf16>
    %152 = vector.shape_cast %151 : vector<1x32x128xbf16> to vector<32x128xbf16>
    %cst_47 = arith.constant dense<0.000000e+00> : vector<8x128xf32>
    %153 = tpu.matmul %150, %152, %cst_47 {dimension_numbers = #tpu.dot_dimension_numbers<[1], [0], [0], [1], [0, 0, 1, 1], [], []>} : vector<8x32xbf16>, vector<32x128xbf16>, vector<8x128xf32> -> vector<8x128xf32>
    %154 = vector.broadcast %12 : vector<1x128xf32> to vector<8x128xf32>
    %155 = arith.addf %153, %154 : vector<8x128xf32>
    %cst_48 = arith.constant 5.000000e-01 : f32
    %156 = vector.broadcast %cst_48 : f32 to vector<8x128xf32>
    %157 = arith.mulf %156, %155 : vector<8x128xf32>
    %cst_49 = arith.constant 0.636619746 : f32
    %158 = math.sqrt %cst_49 : f32
    %159 = arith.mulf %155, %155 : vector<8x128xf32>
    %160 = arith.mulf %155, %159 : vector<8x128xf32>
    %cst_50 = arith.constant 4.471500e-02 : f32
    %161 = vector.broadcast %cst_50 : f32 to vector<8x128xf32>
    %162 = arith.mulf %161, %160 : vector<8x128xf32>
    %163 = arith.addf %155, %162 : vector<8x128xf32>
    %164 = vector.broadcast %158 : f32 to vector<8x128xf32>
    %165 = arith.mulf %164, %163 : vector<8x128xf32>
    %166 = math.tanh %165 : vector<8x128xf32>
    %cst_51 = arith.constant 1.000000e+00 : f32
    %167 = vector.broadcast %cst_51 : f32 to vector<8x128xf32>
    %168 = arith.addf %167, %166 : vector<8x128xf32>
    %169 = arith.mulf %157, %168 : vector<8x128xf32>
    %170 = arith.truncf %169 : vector<8x128xf32> to vector<8x128xbf16>
    %c0_52 = arith.constant 0 : index
    %c0_53 = arith.constant 0 : index
    %c0_54 = arith.constant 0 : index
    %171 = vector.load %arg7[%c0_52, %c0_53, %c0_54] : memref<1x128x32xbf16, #tpu.memory_space<vmem>>, vector<1x128x32xbf16>
    %172 = vector.shape_cast %171 : vector<1x128x32xbf16> to vector<128x32xbf16>
    %cst_55 = arith.constant dense<0.000000e+00> : vector<8x32xf32>
    %173 = tpu.matmul %170, %172, %cst_55 {dimension_numbers = #tpu.dot_dimension_numbers<[1], [0], [0], [1], [0, 0, 1, 1], [], []>} : vector<8x128xbf16>, vector<128x32xbf16>, vector<8x32xf32> -> vector<8x32xf32>
    %174 = arith.addf %127, %173 : vector<8x32xf32>
    %175 = vector.broadcast %11 : vector<1x32xf32> to vector<8x32xf32>
    %176 = arith.addf %174, %175 : vector<8x32xf32>
    %c0_56 = arith.constant 0 : index
    %c0_57 = arith.constant 0 : index
    %177 = vector.load %arg11[%c0_56, %c0_57] : memref<8x32xf32, #tpu.memory_space<vmem>>, vector<8x32xf32>
    tpu.vector_store %arg11[%c0_56, %c0_57], %176 {strides = array<i32>} : memref<8x32xf32, #tpu.memory_space<vmem>>, vector<8x32xf32>,
    %c1_i32 = arith.constant 1 : i32
    %178 = arith.cmpi eq, %arg1, %c1_i32 : i32
    %179 = arith.extui %178 : i1 to i32
    %c0_i32_58 = arith.constant 0 : i32
    %180 = arith.cmpi ne, %179, %c0_i32_58 : i32
    scf.if %180 {
      %c0_59 = arith.constant 0 : index
      %c0_60 = arith.constant 0 : index
      %181 = vector.load %arg8[%c0_59, %c0_60] : memref<2x32xf32, #tpu.memory_space<vmem>>, vector<2x32xf32>
      %182 = vector.extract_strided_slice %181 {offsets = [0, 0], sizes = [1, 32], strides = [1, 1]} : vector<2x32xf32> to vector<1x32xf32>
      %183 = vector.extract_strided_slice %181 {offsets = [1, 0], sizes = [1, 32], strides = [1, 1]} : vector<2x32xf32> to vector<1x32xf32>
      %cst_61 = arith.constant dense<0.000000e+00> : vector<8xf32>
      %184 = vector.multi_reduction <add>, %176, %cst_61 [1] : vector<8x32xf32> to vector<8xf32>
      %185 = vector.shape_cast %184 : vector<8xf32> to vector<8x1xf32>
      %cst_62 = arith.constant 3.200000e+01 : f32
      %186 = vector.broadcast %cst_62 : f32 to vector<8x1xf32>
      %187 = arith.divf %185, %186 : vector<8x1xf32>
      %188 = vector.broadcast %187 : vector<8x1xf32> to vector<8x32xf32>
      %189 = arith.subf %176, %188 : vector<8x32xf32>
      %190 = arith.mulf %189, %189 : vector<8x32xf32>
      %cst_63 = arith.constant dense<0.000000e+00> : vector<8xf32>
      %191 = vector.multi_reduction <add>, %190, %cst_63 [1] : vector<8x32xf32> to vector<8xf32>
      %192 = vector.shape_cast %191 : vector<8xf32> to vector<8x1xf32>
      %cst_64 = arith.constant 3.200000e+01 : f32
      %193 = vector.broadcast %cst_64 : f32 to vector<8x1xf32>
      %194 = arith.divf %192, %193 : vector<8x1xf32>
      %195 = vector.broadcast %187 : vector<8x1xf32> to vector<8x32xf32>
      %196 = arith.subf %176, %195 : vector<8x32xf32>
      %cst_65 = arith.constant 9.99999974E-6 : f32
      %197 = vector.broadcast %cst_65 : f32 to vector<8x1xf32>
      %198 = arith.addf %194, %197 : vector<8x1xf32>
      %199 = math.sqrt %198 : vector<8x1xf32>
      %200 = vector.broadcast %199 : vector<8x1xf32> to vector<8x32xf32>
      %201 = arith.divf %196, %200 : vector<8x32xf32>
      %202 = vector.broadcast %182 : vector<1x32xf32> to vector<8x32xf32>
      %203 = arith.mulf %202, %201 : vector<8x32xf32>
      %204 = vector.broadcast %183 : vector<1x32xf32> to vector<8x32xf32>
      %205 = arith.addf %203, %204 : vector<8x32xf32>
      %206 = arith.truncf %205 : vector<8x32xf32> to vector<8x32xbf16>
      %c0_66 = arith.constant 0 : index
      %c0_67 = arith.constant 0 : index
      %207 = vector.load %arg9[%c0_66, %c0_67] : memref<32x128xbf16, #tpu.memory_space<vmem>>, vector<32x128xbf16>
      %cst_68 = arith.constant dense<0.000000e+00> : vector<8x128xf32>
      %208 = tpu.matmul %206, %207, %cst_68 {dimension_numbers = #tpu.dot_dimension_numbers<[1], [0], [0], [1], [0, 0, 1, 1], [], []>} : vector<8x32xbf16>, vector<32x128xbf16>, vector<8x128xf32> -> vector<8x128xf32>
      %c0_69 = arith.constant 0 : index
      %c0_70 = arith.constant 0 : index
      %c0_71 = arith.constant 0 : index
      %209 = vector.load %arg10[%c0_69, %c0_70, %c0_71] : memref<1x8x128xf32, #tpu.memory_space<vmem>>, vector<1x8x128xf32>
      %210 = vector.shape_cast %209 : vector<1x8x128xf32> to vector<8x128xf32>
      %211 = vector.shape_cast %208 : vector<8x128xf32> to vector<1x8x128xf32>
      tpu.vector_store %arg10[%c0_69, %c0_70, %c0_71], %211 {strides = array<i32>} : memref<1x8x128xf32, #tpu.memory_space<vmem>>, vector<1x8x128xf32>,
    } else {
    }
    return
  }
  func.func @transform_0(%arg0: i32, %arg1: i32) -> (i32, i32, i32) {
    %c0_i32 = arith.constant 0 : i32
    %c0_i32_0 = arith.constant 0 : i32
    %c0_i32_1 = arith.constant 0 : i32
    return %arg0, %c0_i32, %c0_i32_0 : i32, i32, i32
  }
  func.func @transform_1(%arg0: i32, %arg1: i32) -> (i32, i32, i32) {
    %c0_i32 = arith.constant 0 : i32
    %c0_i32_0 = arith.constant 0 : i32
    %c0_i32_1 = arith.constant 0 : i32
    return %arg1, %c0_i32, %c0_i32_0 : i32, i32, i32
  }
  func.func @transform_2(%arg0: i32, %arg1: i32) -> (i32, i32, i32) {
    %c0_i32 = arith.constant 0 : i32
    %c0_i32_0 = arith.constant 0 : i32
    %c0_i32_1 = arith.constant 0 : i32
    return %arg1, %c0_i32, %c0_i32_0 : i32, i32, i32
  }
  func.func @transform_3(%arg0: i32, %arg1: i32) -> (i32, i32, i32) {
    %c0_i32 = arith.constant 0 : i32
    %c0_i32_0 = arith.constant 0 : i32
    %c0_i32_1 = arith.constant 0 : i32
    return %arg1, %c0_i32, %c0_i32_0 : i32, i32, i32
  }
  func.func @transform_4(%arg0: i32, %arg1: i32) -> (i32, i32, i32) {
    %c0_i32 = arith.constant 0 : i32
    %c0_i32_0 = arith.constant 0 : i32
    %c0_i32_1 = arith.constant 0 : i32
    return %arg1, %c0_i32, %c0_i32_0 : i32, i32, i32
  }
  func.func @transform_5(%arg0: i32, %arg1: i32) -> (i32, i32, i32) {
    %c0_i32 = arith.constant 0 : i32
    %c0_i32_0 = arith.constant 0 : i32
    %c0_i32_1 = arith.constant 0 : i32
    return %arg1, %c0_i32, %c0_i32_0 : i32, i32, i32
  }
  func.func @transform_6(%arg0: i32, %arg1: i32) -> (i32, i32) {
    %c0_i32 = arith.constant 0 : i32
    %c0_i32_0 = arith.constant 0 : i32
    %c0_i32_1 = arith.constant 0 : i32
    return %c0_i32, %c0_i32_0 : i32, i32
  }
  func.func @transform_7(%arg0: i32, %arg1: i32) -> (i32, i32) {
    %c0_i32 = arith.constant 0 : i32
    %c0_i32_0 = arith.constant 0 : i32
    %c0_i32_1 = arith.constant 0 : i32
    return %c0_i32, %c0_i32_0 : i32, i32
  }
  func.func @transform_8(%arg0: i32, %arg1: i32) -> (i32, i32, i32) {
    %c0_i32 = arith.constant 0 : i32
    %c0_i32_0 = arith.constant 0 : i32
    %c0_i32_1 = arith.constant 0 : i32
    return %arg0, %c0_i32, %c0_i32_0 : i32, i32, i32
  }
}

</mosaic_0001>

<bundles_post_ra>
// kernel: tpu_custom_call.1
= control target key start
LH: loop header
LB: loop body
LE: loop exit
PB: predicated region body
PF: predicated region fallthrough
CT: control target
= control target key end

     0   :  { %s1875_s0 = inlined_call_operand.vmem [shape: f32[2,8,32], index: 0, kind: input, shape index: {}]   ;;  %s1876_s1 = inlined_call_operand.vmem [shape: f32[2,8,128], index: 1, kind: input, shape index: {}]   ;;  %s1877_s2 = inlined_call_operand.vmem [shape: bf16[2,32,96], index: 2, kind: input, shape index: {}]   ;;  %s1878_s3 = inlined_call_operand.vmem [shape: bf16[2,32,32], index: 3, kind: input, shape index: {}]   ;;  %s1879_s4 = inlined_call_operand.vmem [shape: bf16[2,32,128], index: 4, kind: input, shape index: {}]   ;;  %s1880_s5 = inlined_call_operand.vmem [shape: bf16[2,128,32], index: 5, kind: input, shape index: {}]   ;;  %s1881_s6 = inlined_call_operand.vmem [shape: f32[2,32], index: 6, kind: input, shape index: {}]   ;;  %s1882_s7 = inlined_call_operand.vmem [shape: bf16[32,128], index: 7, kind: input, shape index: {}]   ;;  %s1883_s8 = inlined_call_operand.hbm [shape: f32[2,8,128], index: 8, kind: output, shape index: {}]  }
   0x1   :  { %1893 = sst [smem:[#allocation15_spill]] %s1875_s0 }
   0x2   :  { %13 = vsyncpa [#allocation4], 0 }
   0x3   :  { %15 = vsyncpa [#allocation4 + $0x1], 0  ;;  %s1621_s27 = smov 0   ;;  %s1623_s28 = smov 0  }
   0x4   :  { %s1625_s29 = smov 0   ;;  %s1627_s30 = smov 0  }
   0x5   :  { %s1629_s9 = smov 0   ;;  %s1631_s10 = smov 0  }
   0x6   :  { %s1633_s11 = smov 0   ;;  %s1635_s12 = smov 0  }
   0x7 LB: > { %1894 = sst [smem:[#allocation6_spill]] %s1530_s27  ;;  %s1223_s13 = sadd.s32 4294967295, %s1558_s12   ;;  %s1558_s12 = sphi %s1635_s12, %s21_s12   ;;  %s1554_s11 = sphi %s1633_s11, %s1915_s11   ;;  %s1550_s10 = sphi %s1631_s10, %s1919_s10   ;;  %s1546_s9 = sphi %s1629_s9, %s1913_s9   ;;  %s1542_s30 = sphi %s1627_s30, %s1912_s30   ;;  %s1538_s29 = sphi %s1625_s29, %s1918_s29   ;;  %s1534_s28 = sphi %s1623_s28, %s1917_s28   ;;  %s1530_s27 = sphi %s1621_s27, %s1916_s27  }
   0x8   : > { %1895 = sst [smem:[#allocation7_spill]] %s1538_s29  ;;  %s1224_s14 = sadd.s32 4294967294, %s1558_s12  }
   0x9   : > { %1896 = sst [smem:[#allocation8_spill]] %s1550_s10  ;;  %s30_s15 = sadd.s32 1, %s1550_s10 }
   0xa   : > { %1897 = sst [smem:[#allocation9_spill]] %s1554_s11  ;;  %p31_p0 = scmp.ge.s32.totalorder %s30_s15, 2 }
   0xb   : > { %1898 = sst [smem:[#allocation10_spill]] %s1558_s12  ;;  %s33_s16 = sadd.s32 1, %s1554_s11 }
   0xc   : > { %p248_p1 = scmp.ne.s32.totalorder %s1538_s29, %s1534_s28  ;;  %p249_p2 = scmp.eq.s32.totalorder %s1223_s13, 3 }
   0xd   : > { %s1921_s15 = smov (%p31_p0, %s30_s15), 0  ;;  %s1923_s16 = smov (!%p31_p0, %s33_s16), %s1554_s11 }
   0xe   : > { %1899 = sst [smem:[#allocation11_spill]] %s1921_s15  ;;  %p1670_p3 = por %p249_p2, %p248_p1 }
   0xf   : > { %p254_p4 = scmp.ne.s32.totalorder %s1534_s28, %s1530_s27  ;;  %p35_p5 = scmp.ge.s32.totalorder %s1923_s16, 2 }
  0x10   : > { %p255_p6 = scmp.eq.s32.totalorder %s1224_s14, 3  ;;  %p1227_p7 = scmp.ge.s32.totalorder %s1558_s12, 1 }
  0x11   : > { %p325_p8 = scmp.lt.s32.totalorder %s1558_s12, 5  ;;  %s1925_s16 = smov (%p35_p5, %s1923_s16), 0 }
  0x12   : > { %1901 = sst [smem:[#allocation12_spill]] %s1925_s16  ;;  %p1680_p9 = por %p255_p6, %p254_p4 }
  0x13   : > { %p326_p10 = pnand %p1227_p7, %p325_p8  ;;  %s235_s19 = ssub.s32 %s1554_s11, %s1925_s16 }
  0x14   : > { %s1902_s18 = scalar_select %p1680_p9, 1, 0 }
  0x15   : > { %s238_s20 = sadd.s32 1, %s1538_s29  ;;  %p236_p11 = scmp.eq.s32.totalorder %s235_s19, 0 }
  0x16   : > { %1903 = sst [smem:[#allocation13_spill]] %s1902_s18  ;;  %329 = sbr.rel (%p326_p10) target bundleno = 2776 (0xad8), region = 52 }
  0x17   : > { %s1688_s21 = scalar_select %p236_p11, %s1538_s29, %s238_s20  }
  0x18   : > { %s1888_s22 = sand.u32 (!%p326_p10), 1, %s1534_s28   ;;  %p382_p12 = scmp.lt.s32.totalorder (!%p326_p10), %s1546_s9, 1 }
  0x19   : > { %1904 = sst [smem:[#allocation14_spill]] %s1688_s21  ;;  %s1694_s23 = sshll.u32 (!%p326_p10), %s1888_s22, 3 }
  0x1a   : > { %p386_p13 = scmp.lt.s32.totalorder (!%p326_p10), %s1542_s30, 1  ;;  %s1905_s0 = sld [smem:[#allocation15_spill]] (!%p326_p10) }
  0x1b   : > { %s383_s24 = scalar_select %p382_p12, %s1546_s9, 1 }
  0x1c   : > { %s387_s25 = scalar_select %p386_p13, %s1542_s30, 1 }
  0x1d   : > { %s1229_s26 = sshll.u32 %s383_s24, 3  ;;  %p1239_p0 = scmp.ne.s32.totalorder %s1542_s30, 0 }
  0x1e   : > { %s1230_s20 = sshll.u32 %s387_s25, 3  ;;  %s1325_s10 = sshll.u32 %s387_s25, 4 }
  0x1f   : > { %s1705_s11 = scalar_lea.vmem %s1876_s1, %s1230_s20  ;;  %s1710_s22 = scalar_lea.vmem %s1877_s2, %s1325_s10 }
  0x20   : > { %s385_s19 = scalar_lea.vmem %s1905_s0, %s1229_s26  ;;  %s1715_s24 = scalar_lea.vmem %s1878_s3, %s1325_s10 }
  0x21   : > { %s1720_s26 = scalar_lea.vmem %s1879_s4, %s1325_s10  ;;  %s1328_s14 = sshll.u32 %s387_s25, 6 }
  0x22   : > { %s1725_s20 = scalar_lea.vmem %s1880_s5, %s1328_s14  ;;  %s381_s0 = scalar_lea.vmem [#allocation3], %s1694_s23 }
  0x23   : > { %414 = sbr.rel (%p1239_p0) target bundleno = 42 (0x2a), region = 56 }
  0x28   : > { %v415_v0 = vld [vmem:[%s385_s19] sm:$0xff]  ;;  %vm416_vm0 = vcmask 261120  }
  0x29   : > { %417 = vst.msk [vmem:[#allocation2] sm:$0xff] %vm416_vm0, %v415_v0 }
  0x2a PF: > { %vm426_vm1 = vcmask 261120   ;;  %v1560_v3 = vmov 32.0   ;;  %v1330_v15 = vld [vmem:[%s1710_s22 + $0x8] sm:$0xff]  ;;  %v1329_v16 = vld [vmem:[%s1710_s22] sm:$0xff]  ;;  %s1561_s27 = smov 120   ;;  %s1562_s29 = smov 88   ;;  %v420_v54 = vlaneseq }
  0x2b   : > { %1432 = vrcp.f32 %v1560_v3  ;;  %502 = vmatpush.bf16.msra.mxu0 %v1330_v15  ;;  %v1742_v36 = vld [vmem:[%s1705_s11] sm:$0xff]  ;;  %s1563_s10 = smov 96   ;;  %s1564_s11 = smov 80   ;;  %vm512_vm9 = vcmask 64512   ;;  %v1568_v58 = vmov -1e+09  }
  0x2c   : > { %v472_v40 = vperm.slane %v1742_v36, 0  ;;  %v474_v43 = vperm.slane %v1742_v36, 1  ;;  %s1565_s12 = smov 64   ;;  %s1566_s18 = smov 72   ;;  %v421_v55 = vshrl.u32 %v420_v54, 7  ;;  %v423_v56 = vand.u32 127, %v420_v54 }
  0x2d   : > { %s1567_s21 = smov 112   ;;  %s1569_s22 = smov 104   ;;  %vm790_vm11 = vcmask 130048   ;;  %vm792_vm12 = vcmask 195584  }
  0x2e   : > { %vm424_vm10 = vcmp.le.s32.totalorder %v423_v56, %v421_v55  ;;  %s1570_s25 = smov 56   ;;  %s1571_s19 = smov 48   ;;  %v1332_v56 = vld [vmem:[%s1715_s24 + $0x8] sm:$0xff] }
  0x2f   : > { %503 = vmatpush.bf16.msra.mxu0 %v1329_v16  ;;  %v425_v59 = vsel %vm424_vm10, 0.0, %v1568_v58  ;;  %s1572_s13 = smov 40   ;;  %s1573_s14 = smov 8  }
  0x30   : > { %v1729_v1 = vld [vmem:[#allocation2] sm:$0xff]  ;;  %s1574_s15 = smov 16   ;;  %s1575_s16 = smov 24  }
  0x31   : > { %v427_v2 = vsel %vm426_vm1, %v1729_v1, 0.0  ;;  %v1433_v4 = vpop.eup %1432  ;;  %p1311_p1 = scmp.ne.s32.totalorder %s1542_s30, 1 }
  0x32   : > { %428 = vadd.xlane.f32.xlu0 %v427_v2  ;;  %v431_v5 = vmul.f32 32.0, %v1433_v4  ;;  %vm435_vm2 = vweird.f32 %v1433_v4 }
  0x34   : > { %v432_v6 = vsub.f32 1.0, %v431_v5 }
  0x36   : > { %v433_v7 = vmul.f32 %v1433_v4, %v432_v6 }
  0x38   : > { %v434_v8 = vadd.f32 %v1433_v4, %v433_v7 }
  0x3a   : > { %v1733_v9 = vsel %vm435_vm2, %v1433_v4, %v434_v8 }
  0xa5   : > { %v429_v10 = vpop.xlane.xlu0 %428 }
  0xa6   : > { %v437_v11 = vmul.f32 %v1733_v9, %v429_v10 }
  0xa8   : > { %v438_v12 = vsub.f32 %v1729_v1, %v437_v11 }
  0xaa   : > { %v439_v13 = vmul.f32 %v438_v12, %v438_v12 }
  0xac   : > { %v440_v14 = vsel %vm426_vm1, %v439_v13, 0.0 }
  0xad   : > { %441 = vadd.xlane.f32.xlu0 %v440_v14 }
 0x120   : > { %v442_v17 = vpop.xlane.xlu0 %441 }
 0x121   : > { %v443_v18 = vmul.f32 %v442_v17, %v1733_v9 }
 0x123   : > { %v444_v19 = vadd.f32 1e-05, %v443_v18 }
 0x125   : > { %1434 = vrsqrt.f32 %v444_v19  ;;  %vm452_vm3 = vcmp.eq.f32.partialorder %v444_v19, inf  ;;  %v455_v27 = vand.u32 2147483648, %v444_v19  ;;  %vm454_vm4 = vcmp.eq.f32.partialorder %v444_v19, 0.0 }
 0x12b   : > { %v1435_v20 = vpop.eup %1434 }
 0x12c   : > { %v446_v21 = vmul.f32 %v1435_v20, %v444_v19 }
 0x12e   : > { %v447_v22 = vmul.f32 %v1435_v20, %v446_v21 }
 0x130   : > { %v448_v23 = vmul.f32 0.5, %v447_v22 }
 0x132   : > { %v449_v24 = vsub.f32 1.5, %v448_v23 }
 0x134   : > { %v450_v25 = vmul.f32 %v1435_v20, %v449_v24 }
 0x136   : > { %v451_v26 = vmul.f32 %v450_v25, %v444_v19 }
 0x138   : > { %v453_v28 = vsel %vm452_vm3, %v444_v19, %v451_v26 }
 0x139   : > { %v456_v29 = vsel %vm454_vm4, %v455_v27, %v453_v28 }
 0x13a   : > { %1436 = vrcp.f32 %v456_v29  ;;  %v468_v33 = vand.u32 2147483648, %v456_v29  ;;  %v466_v35 = vand.u32 2147483647, %v456_v29  ;;  %vm462_vm6 = vweird.f32 %v456_v29 }
 0x13c   : > { %v469_v38 = vor.u32 1.1754944e-38, %v468_v33  ;;  %vm467_vm8 = vcmp.eq.f32.partialorder %v466_v35, 8.507059e+37 }
 0x140   : > { %v1437_v30 = vpop.eup %1436 }
 0x141   : > { %v458_v31 = vmul.f32 %v1437_v30, %v456_v29  ;;  %vm463_vm5 = vweird.f32 %v1437_v30 }
 0x142   : > { %vm464_vm7 = vmor %vm462_vm6, %vm463_vm5 }
 0x143   : > { %v459_v32 = vsub.f32 1.0, %v458_v31 }
 0x145   : > { %v460_v34 = vmul.f32 %v1437_v30, %v459_v32 }
 0x147   : > { %v461_v37 = vadd.f32 %v1437_v30, %v460_v34 }
 0x149   : > { %v465_v39 = vsel %vm464_vm7, %v1437_v30, %v461_v37 }
 0x14a   : > { %v470_v41 = vsel %vm467_vm8, %v469_v38, %v465_v39 }
 0x14b   : > { %v471_v42 = vmul.f32 %v470_v41, %v438_v12 }
 0x14d   : > { %v473_v44 = vmul.f32 %v472_v40, %v471_v42 }
 0x14f   : > { %v475_v45 = vadd.f32 %v474_v43, %v473_v44 }
 0x151   : > { %v476_v46 = vpack.c.bf16 %v475_v45, %v475_v45 }
 0x153   : > { %1248 = vmatmul.msk.bf16.vlgmr.msra.gmra.mxu0 %vm426_vm1, %v476_v46 }
 0x1d0   : > { %v1747_v47 = vpop.f32.mrf.mxu0 }
 0x1d1   : > { %576 = vrot.lane.b32.xlu0 %v1747_v47, %s1561_s27  ;;  %578 = vrot.lane.b32.xlu2 %v1747_v47, %s1562_s29 }
 0x1d2   : > { %510 = vrot.lane.b32.xlu1 %v1747_v47, %s1563_s10 }
 0x1d8   : > { %v507_v48 = vpop.f32.mrf.mxu0 }
 0x1d9   : > { %645 = vrot.lane.b32.xlu0 %v1747_v47, %s1564_s11  ;;  %550 = vrot.lane.b32.xlu2 %v1747_v47, %s1565_s12 }
 0x1e1   : > { %712 = vrot.lane.b32.xlu0 %v1747_v47, %s1566_s18  ;;  %643 = vrot.lane.b32.xlu2 %v1747_v47, %s1567_s21 }
 0x22b   : > { %v579_v49 = vpop.permute.xlu2 %578 }
 0x22c   : > { %1252 = vmatpush.xpose.msk.msra.mxu3 %vm512_vm9, %v579_v49 }
 0x233   : > { %v551_v52 = vpop.permute.xlu2 %550 }
 0x23b   : > { %v644_v15 = vpop.permute.xlu2 %643 }
 0x243   : > { %v577_v50 = vpop.permute.xlu0 %576 }
 0x244   : > { %v511_v51 = vpop.permute.xlu1 %510  ;;  %1253 = vmatmul.msk.f32.vlgmr.msra.gmra.mxu3 %vm512_vm9, %v577_v50 }
 0x245   : > { %1249 = vmatpush.xpose.msk.msra.mxu1 %vm512_vm9, %v511_v51 }
 0x248   : > { %1250 = vmatmul.msk.f32.vlgmr.msra.gmra.mxu1 %vm512_vm9, %v1747_v47 }
 0x249   : > { %571 = vmatpush.msrb.mxu1 %v551_v52 }
 0x24b   : > { %v646_v53 = vpop.permute.xlu0 %645 }
 0x24c   : > { %1255 = vmatpush.xpose.msk.msra.mxu1 %vm512_vm9, %v646_v53 }
 0x253   : > { %v713_v19 = vpop.permute.xlu0 %712 }
 0x2c5   : > { %v534_v57 = vpop.f32.mrf.mxu1 }
 0x2c6   : > { %v537_v60 = vmul.f32 0.35355338, %v534_v57  ;;  %v1331_v57 = vld [vmem:[%s1715_s24] sm:$0xff] }
 0x2c7   : > { %v601_v61 = vpop.f32.mrf.mxu3 }
 0x2c8   : > { %v538_v62 = vadd.f32 %v537_v60, %v425_v59  ;;  %v604_v63 = vmul.f32 0.35355338, %v601_v61 }
 0x2ca   : > { %v539_v0 = vsel %vm512_vm9, %v538_v62, -inf  ;;  %v605_v2 = vadd.f32 %v604_v63, %v425_v59 }
 0x2cb   : > { %540 = vmax.xlane.f32.xlu1 %v539_v0 }
 0x2cc   : > { %v606_v3 = vsel %vm512_vm9, %v605_v2, -inf }
 0x2d3   : > { %607 = vmax.xlane.f32.xlu1 %v606_v3 }
 0x33e   : > { %v541_v4 = vpop.xlane.xlu1 %540 }
 0x33f   : > { %v542_v5 = vsub.f32 %v538_v62, %v541_v4 }
 0x341   : > { %v543_v6 = vmul.f32 1.442695, %v542_v5 }
 0x343   : > { %1438 = vpow2.f32 %v543_v6 }
 0x346   : > { %v608_v7 = vpop.xlane.xlu1 %607 }
 0x347   : > { %v609_v8 = vsub.f32 %v605_v2, %v608_v7  ;;  %v799_v2 = vperm.slane %v1742_v36, 4 }
 0x349   : > { %v1439_v10 = vpop.eup %1438  ;;  %v610_v11 = vmul.f32 1.442695, %v609_v8 }
 0x34a   : > { %v545_v12 = vsel %vm512_vm9, %v1439_v10, 0.0 }
 0x34b   : > { %1440 = vpow2.f32 %v610_v11  ;;  %546 = vadd.xlane.f32.xlu2 %v545_v12 }
 0x351   : > { %v1441_v13 = vpop.eup %1440 }
 0x352   : > { %v612_v14 = vsel %vm512_vm9, %v1441_v13, 0.0 }
 0x353   : > { %613 = vadd.xlane.f32.xlu1 %v612_v14  ;;  %v1334_v14 = vld [vmem:[%s1720_s26 + $0x8] sm:$0xff] }
 0x354   : > { %898 = vmatpush.bf16.msrb.mxu0 %v1334_v14 }
 0x363   : > { %710 = vrot.lane.b32.xlu2 %v1747_v47, %s1569_s22 }
 0x36c   : > { %617 = vrot.lane.b32.xlu1 %v1747_v47, %s1570_s25 }
 0x3be   : > { %v547_v16 = vpop.xlane.xlu2 %546 }
 0x3bf   : > { %1442 = vrcp.f32 %v547_v16 }
 0x3c5   : > { %v1443_v17 = vpop.eup %1442 }
 0x3c6   : > { %v549_v18 = vmul.f32 %v1443_v17, %v1439_v10  ;;  %v614_v20 = vpop.xlane.xlu1 %613  ;;  %v711_v21 = vpop.permute.xlu2 %710 }
 0x3c7   : > { %1444 = vrcp.f32 %v614_v20 }
 0x3c8   : > { %1251 = vmatmul.msk.f32.vlgmr.msrb.gmra.mxu1 %vm512_vm9, %v549_v18 }
 0x3c9   : > { %1258 = vmatpush.xpose.msk.msrb.mxu1 %vm512_vm9, %v713_v19 }
 0x3cd   : > { %v1445_v22 = vpop.eup %1444 }
 0x3ce   : > { %v616_v24 = vmul.f32 %v1445_v22, %v1441_v13 }
 0x3d0   : > { %1256 = vmatmul.msk.f32.vlgmr.msra.gmra.mxu1 %vm512_vm9, %v644_v15 }
 0x3d8   : > { %1259 = vmatmul.msk.f32.vlgmr.msrb.gmra.mxu1 %vm512_vm9, %v711_v21 }
 0x3de   : > { %v618_v23 = vpop.permute.xlu1 %617 }
 0x3df   : > { %638 = vmatpush.msrb.mxu3 %v618_v23  ;;  %v1342_v23 = vld [vmem:[%s1725_s20 + $0x38] sm:$0xff] }
 0x3e0   : > { %1254 = vmatmul.msk.f32.vlgmr.msrb.gmra.mxu3 %vm512_vm9, %v616_v24  ;;  %979 = vmatpush.bf16.msra.mxu2 %v1342_v23 }
 0x445   : > { %v573_v25 = vpop.f32.mrf.mxu1 }
 0x44d   : > { %v668_v26 = vpop.f32.mrf.mxu1 }
 0x44e   : > { %v671_v27 = vmul.f32 0.35355338, %v668_v26 }
 0x450   : > { %v672_v28 = vadd.f32 %v671_v27, %v425_v59 }
 0x452   : > { %v673_v29 = vsel %vm512_vm9, %v672_v28, -inf }
 0x453   : > { %674 = vmax.xlane.f32.xlu0 %v673_v29 }
 0x455   : > { %v735_v30 = vpop.f32.mrf.mxu1 }
 0x456   : > { %v738_v31 = vmul.f32 0.35355338, %v735_v30 }
 0x458   : > { %v739_v32 = vadd.f32 %v738_v31, %v425_v59 }
 0x45a   : > { %v740_v33 = vsel %vm512_vm9, %v739_v32, -inf }
 0x45b   : > { %741 = vmax.xlane.f32.xlu2 %v740_v33 }
 0x463   : > { %v640_v46 = vpop.f32.mrf.mxu3 }
 0x473   : > { %684 = vrot.lane.b32.xlu2 %v1747_v47, %s1571_s19 }
 0x4c6   : > { %v675_v34 = vpop.xlane.xlu0 %674 }
 0x4c7   : > { %v676_v35 = vsub.f32 %v672_v28, %v675_v34 }
 0x4c9   : > { %v677_v37 = vmul.f32 1.442695, %v676_v35 }
 0x4cb   : > { %1446 = vpow2.f32 %v677_v37 }
 0x4ce   : > { %v742_v38 = vpop.xlane.xlu2 %741 }
 0x4cf   : > { %v743_v39 = vsub.f32 %v739_v32, %v742_v38 }
 0x4d1   : > { %v1447_v40 = vpop.eup %1446  ;;  %v744_v41 = vmul.f32 1.442695, %v743_v39 }
 0x4d2   : > { %v679_v42 = vsel %vm512_vm9, %v1447_v40, 0.0 }
 0x4d3   : > { %1448 = vpow2.f32 %v744_v41  ;;  %680 = vadd.xlane.f32.xlu1 %v679_v42 }
 0x4d6   : > { %v685_v43 = vpop.permute.xlu2 %684 }
 0x4d7   : > { %705 = vmatpush.msra.mxu3 %v685_v43  ;;  %v869_v43 = vperm.slane %v1742_v36, 3 }
 0x4d9   : > { %v1449_v44 = vpop.eup %1448  ;;  %821 = vmatpush.bf16.msrb.mxu3 %v1332_v56 }
 0x4da   : > { %v746_v45 = vsel %vm512_vm9, %v1449_v44, 0.0 }
 0x4db   : > { %747 = vadd.xlane.f32.xlu0 %v746_v45 }
 0x4dd   : > { %822 = vmatpush.bf16.msrb.mxu3 %v1331_v57 }
 0x4ec   : > { %751 = vrot.lane.b32.xlu1 %v1747_v47, %s1572_s13 }
 0x4ef   : > { %778 = vrot.lane.b32.xlu0 %v640_v46, %s1573_s14 }
 0x546   : > { %v681_v48 = vpop.xlane.xlu1 %680 }
 0x547   : > { %1450 = vrcp.f32 %v681_v48  ;;  %v1340_v48 = vld [vmem:[%s1725_s20 + $0x28] sm:$0xff] }
 0x54d   : > { %v1451_v49 = vpop.eup %1450 }
 0x54e   : > { %v683_v50 = vmul.f32 %v1451_v49, %v1447_v40  ;;  %v748_v51 = vpop.xlane.xlu0 %747  ;;  %v867_v40 = vperm.slane %v1742_v36, 2  ;;  %v1339_v49 = vld [vmem:[%s1725_s20 + $0x20] sm:$0xff] }
 0x54f   : > { %1452 = vrcp.f32 %v748_v51  ;;  %v1337_v51 = vld [vmem:[%s1725_s20 + $0x10] sm:$0xff] }
 0x550   : > { %1257 = vmatmul.msk.f32.vlgmr.msra.gmra.mxu3 %vm512_vm9, %v683_v50  ;;  %v1338_v50 = vld [vmem:[%s1725_s20 + $0x18] sm:$0xff] }
 0x555   : > { %v1453_v52 = vpop.eup %1452 }
 0x556   : > { %v750_v53 = vmul.f32 %v1453_v52, %v1449_v44  ;;  %v1336_v52 = vld [vmem:[%s1725_s20 + $0x8] sm:$0xff] }
 0x55e   : > { %v752_v54 = vpop.permute.xlu1 %751 }
 0x55f   : > { %772 = vmatpush.msra.mxu1 %v752_v54  ;;  %v876_v54 = vperm.slane %v1742_v36, 6 }
 0x560   : > { %1260 = vmatmul.msk.f32.vlgmr.msra.gmra.mxu1 %vm512_vm9, %v750_v53  ;;  %v1335_v53 = vld [vmem:[%s1725_s20] sm:$0xff] }
 0x561   : > { %v779_v59 = vpop.permute.xlu0 %778 }
 0x562   : > { %v789_v60 = vsel %vm512_vm9, %v573_v25, %v779_v59  ;;  %v1341_v25 = vld [vmem:[%s1725_s20 + $0x30] sm:$0xff] }
 0x563   : > { %980 = vmatpush.bf16.msra.mxu2 %v1341_v25 }
 0x567   : > { %981 = vmatpush.bf16.msra.mxu2 %v1340_v48 }
 0x56b   : > { %982 = vmatpush.bf16.msra.mxu2 %v1339_v49 }
 0x56f   : > { %983 = vmatpush.bf16.msra.mxu2 %v1338_v50 }
 0x573   : > { %984 = vmatpush.bf16.msra.mxu2 %v1337_v51 }
 0x577   : > { %985 = vmatpush.bf16.msra.mxu2 %v1336_v52 }
 0x57b   : > { %986 = vmatpush.bf16.msra.mxu2 %v1335_v53 }
 0x5d3   : > { %v707_v47 = vpop.f32.mrf.mxu3 }
 0x5d4   : > { %782 = vrot.lane.b32.xlu1 %v707_v47, %s1574_s15 }
 0x5dd   : > { %v774_v55 = vpop.f32.mrf.mxu1 }
 0x5de   : > { %786 = vrot.lane.b32.xlu1 %v774_v55, %s1575_s16 }
 0x646   : > { %v783_v58 = vpop.permute.xlu1 %782 }
 0x647   : > { %v791_v61 = vsel %vm790_vm11, %v789_v60, %v783_v58 }
 0x650   : > { %v787_v62 = vpop.permute.xlu1 %786 }
 0x651   : > { %v793_v63 = vsel %vm792_vm12, %v791_v61, %v787_v62 }
 0x652   : > { %v794_v0 = vpack.c.bf16 %v793_v63, %v793_v63 }
 0x654   : > { %1269 = vmatmul.msk.bf16.vlgmr.msrb.gmra.mxu3 %vm426_vm1, %v794_v0 }
 0x6d7   : > { %v824_v3 = vpop.f32.mrf.mxu3 }
 0x6d8   : > { %v825_v4 = vadd.f32 %v824_v3, %v799_v2 }
 0x6da   : > { %v1787_v5 = vadd.f32 %v825_v4, %v1729_v1  ;;  %v1333_v1 = vld [vmem:[%s1720_s26] sm:$0xff]  ;;  %v993_v4 = vperm.slane %v1742_v36, 5 }
 0x6db   : > { %899 = vmatpush.bf16.msrb.mxu0 %v1333_v1 }
 0x6dc   : > { %v829_v6 = vsel %vm426_vm1, %v1787_v5, 0.0 }
 0x6dd   : > { %830 = vadd.xlane.f32.xlu2 %v829_v6 }
 0x6df   : > { %v826_v7 = vpop.f32.mrf.mxu3 }
 0x750   : > { %v831_v8 = vpop.xlane.xlu2 %830 }
 0x751   : > { %v832_v10 = vmul.f32 %v831_v8, %v1733_v9 }
 0x753   : > { %v833_v11 = vsub.f32 %v1787_v5, %v832_v10 }
 0x755   : > { %v834_v12 = vmul.f32 %v833_v11, %v833_v11 }
 0x757   : > { %v835_v13 = vsel %vm426_vm1, %v834_v12, 0.0 }
 0x758   : > { %836 = vadd.xlane.f32.xlu0 %v835_v13 }
 0x7cb   : > { %v837_v15 = vpop.xlane.xlu0 %836 }
 0x7cc   : > { %v838_v16 = vmul.f32 %v837_v15, %v1733_v9 }
 0x7ce   : > { %v839_v17 = vadd.f32 1e-05, %v838_v16 }
 0x7d0   : > { %1454 = vrsqrt.f32 %v839_v17  ;;  %vm847_vm13 = vcmp.eq.f32.partialorder %v839_v17, inf  ;;  %v850_v27 = vand.u32 2147483648, %v839_v17  ;;  %vm849_vm14 = vcmp.eq.f32.partialorder %v839_v17, 0.0 }
 0x7d6   : > { %v1455_v18 = vpop.eup %1454 }
 0x7d7   : > { %v841_v19 = vmul.f32 %v1455_v18, %v839_v17 }
 0x7d9   : > { %v842_v20 = vmul.f32 %v1455_v18, %v841_v19 }
 0x7db   : > { %v843_v21 = vmul.f32 0.5, %v842_v20 }
 0x7dd   : > { %v844_v22 = vsub.f32 1.5, %v843_v21 }
 0x7df   : > { %v845_v24 = vmul.f32 %v1455_v18, %v844_v22 }
 0x7e1   : > { %v846_v26 = vmul.f32 %v845_v24, %v839_v17 }
 0x7e3   : > { %v848_v28 = vsel %vm847_vm13, %v839_v17, %v846_v26 }
 0x7e4   : > { %v851_v29 = vsel %vm849_vm14, %v850_v27, %v848_v28 }
 0x7e5   : > { %1456 = vrcp.f32 %v851_v29  ;;  %v863_v33 = vand.u32 2147483648, %v851_v29  ;;  %v861_v35 = vand.u32 2147483647, %v851_v29  ;;  %vm857_vm0 = vweird.f32 %v851_v29 }
 0x7e7   : > { %v864_v38 = vor.u32 1.1754944e-38, %v863_v33  ;;  %vm862_vm3 = vcmp.eq.f32.partialorder %v861_v35, 8.507059e+37 }
 0x7eb   : > { %v1457_v30 = vpop.eup %1456 }
 0x7ec   : > { %v853_v31 = vmul.f32 %v1457_v30, %v851_v29  ;;  %vm858_vm15 = vweird.f32 %v1457_v30 }
 0x7ed   : > { %vm859_vm2 = vmor %vm857_vm0, %vm858_vm15 }
 0x7ee   : > { %v854_v32 = vsub.f32 1.0, %v853_v31 }
 0x7f0   : > { %v855_v34 = vmul.f32 %v1457_v30, %v854_v32 }
 0x7f2   : > { %v856_v37 = vadd.f32 %v1457_v30, %v855_v34 }
 0x7f4   : > { %v860_v39 = vsel %vm859_vm2, %v1457_v30, %v856_v37 }
 0x7f5   : > { %v865_v41 = vsel %vm862_vm3, %v864_v38, %v860_v39 }
 0x7f6   : > { %v866_v42 = vmul.f32 %v865_v41, %v833_v11 }
 0x7f8   : > { %v868_v44 = vmul.f32 %v867_v40, %v866_v42 }
 0x7fa   : > { %v870_v45 = vadd.f32 %v869_v43, %v868_v44 }
 0x7fc   : > { %v871_v46 = vpack.c.bf16 %v870_v45, %v870_v45 }
 0x7fe   : > { %1278 = vmatmul.msk.bf16.vlgmr.msrb.gmra.mxu0 %vm426_vm1, %v871_v46 }
 0x87b   : > { %v901_v47 = vpop.f32.mrf.mxu0 }
 0x87c   : > { %v902_v55 = vadd.f32 %v901_v47, %v876_v54 }
 0x87e   : > { %v906_v56 = vmul.f32 %v902_v55, %v902_v55  ;;  %v905_v63 = vmul.f32 0.5, %v902_v55 }
 0x880   : > { %v907_v57 = vmul.f32 %v906_v56, %v902_v55 }
 0x882   : > { %v908_v58 = vmul.f32 0.044715, %v907_v57 }
 0x883   : > { %v903_v59 = vpop.f32.mrf.mxu0 }
 0x884   : > { %v909_v60 = vadd.f32 %v908_v58, %v902_v55 }
 0x886   : > { %v910_v61 = vmul.f32 0.7978845, %v909_v60 }
 0x888   : > { %1458 = vtanh.f32 %v910_v61 }
 0x88e   : > { %v1459_v62 = vpop.eup %1458 }
 0x88f   : > { %v912_v0 = vadd.f32 1.0, %v1459_v62 }
 0x891   : > { %v913_v2 = vmul.f32 %v912_v0, %v905_v63 }
 0x893   : > { %v914_v3 = vpack.c.bf16 %v913_v2, %v913_v2 }
 0x895   : > { %987 = vmatmul.bf16.vlgmr.msra.gmra.mxu2 %v914_v3 }
 0x918   : > { %v988_v6 = vpop.f32.mrf.mxu2 }
 0x919   : > { %v992_v7 = vadd.f32 %v988_v6, %v1787_v5 }
 0x91b   : > { %v994_v8 = vadd.f32 %v993_v4, %v992_v7 }
 0x91c   : > { %999 = sbr.rel (%p1311_p1) target bundleno = 2761 (0xac9), region = 60 }
 0x91d   : > { %995 = vst.msk [vmem:[#allocation2] sm:$0xff] %vm426_vm1, %v994_v8 }
 0x920   : > { %v990_v10 = vpop.f32.mrf.mxu2 }
 0x921   : > { %v1001_v11 = vsel %vm426_vm1, %v994_v8, 0.0  ;;  %v1344_v5 = vld [vmem:[%s1882_s7 + $0x8] sm:$0xff]  ;;  %v1343_v15 = vld [vmem:[%s1882_s7] sm:$0xff] }
 0x922   : > { %1002 = vadd.xlane.f32.xlu0 %v1001_v11  ;;  %1069 = vmatpush.bf16.msra.mxu0 %v1344_v5  ;;  %v1000_v34 = vld [vmem:[%s1881_s6] sm:$0x3] }
 0x923   : > { %v1039_v39 = vperm.slane %v1000_v34, 0  ;;  %v1041_v42 = vperm.slane %v1000_v34, 1 }
 0x926   : > { %1070 = vmatpush.bf16.msra.mxu0 %v1343_v15 }
 0x995   : > { %v1003_v12 = vpop.xlane.xlu0 %1002 }
 0x996   : > { %v1004_v13 = vmul.f32 %v1003_v12, %v1733_v9 }
 0x998   : > { %v1005_v14 = vsub.f32 %v994_v8, %v1004_v13 }
 0x99a   : > { %v1006_v1 = vmul.f32 %v1005_v14, %v1005_v14 }
 0x99c   : > { %v1007_v36 = vsel %vm426_vm1, %v1006_v1, 0.0 }
 0x99d   : > { %1008 = vadd.xlane.f32.xlu0 %v1007_v36 }
 0xa10   : > { %v1009_v16 = vpop.xlane.xlu0 %1008 }
 0xa11   : > { %v1010_v17 = vmul.f32 %v1009_v16, %v1733_v9 }
 0xa13   : > { %v1011_v18 = vadd.f32 1e-05, %v1010_v17 }
 0xa15   : > { %1460 = vrsqrt.f32 %v1011_v18  ;;  %vm1019_vm4 = vcmp.eq.f32.partialorder %v1011_v18, inf  ;;  %v1022_v26 = vand.u32 2147483648, %v1011_v18  ;;  %vm1021_vm5 = vcmp.eq.f32.partialorder %v1011_v18, 0.0 }
 0xa1b   : > { %v1461_v19 = vpop.eup %1460 }
 0xa1c   : > { %v1013_v20 = vmul.f32 %v1461_v19, %v1011_v18 }
 0xa1e   : > { %v1014_v21 = vmul.f32 %v1461_v19, %v1013_v20 }
 0xa20   : > { %v1015_v22 = vmul.f32 0.5, %v1014_v21 }
 0xa22   : > { %v1016_v23 = vsub.f32 1.5, %v1015_v22 }
 0xa24   : > { %v1017_v24 = vmul.f32 %v1461_v19, %v1016_v23 }
 0xa26   : > { %v1018_v25 = vmul.f32 %v1017_v24, %v1011_v18 }
 0xa28   : > { %v1020_v27 = vsel %vm1019_vm4, %v1011_v18, %v1018_v25 }
 0xa29   : > { %v1023_v28 = vsel %vm1021_vm5, %v1022_v26, %v1020_v27 }
 0xa2a   : > { %1462 = vrcp.f32 %v1023_v28  ;;  %v1035_v32 = vand.u32 2147483648, %v1023_v28  ;;  %v1033_v33 = vand.u32 2147483647, %v1023_v28  ;;  %vm1029_vm7 = vweird.f32 %v1023_v28 }
 0xa2c   : > { %v1036_v37 = vor.u32 1.1754944e-38, %v1035_v32  ;;  %vm1034_vm9 = vcmp.eq.f32.partialorder %v1033_v33, 8.507059e+37 }
 0xa30   : > { %v1463_v29 = vpop.eup %1462 }
 0xa31   : > { %v1025_v30 = vmul.f32 %v1463_v29, %v1023_v28  ;;  %vm1030_vm6 = vweird.f32 %v1463_v29 }
 0xa32   : > { %vm1031_vm8 = vmor %vm1029_vm7, %vm1030_vm6 }
 0xa33   : > { %v1026_v31 = vsub.f32 1.0, %v1025_v30 }
 0xa35   : > { %v1027_v9 = vmul.f32 %v1463_v29, %v1026_v31 }
 0xa37   : > { %v1028_v35 = vadd.f32 %v1463_v29, %v1027_v9 }
 0xa39   : > { %v1032_v38 = vsel %vm1031_vm8, %v1463_v29, %v1028_v35 }
 0xa3a   : > { %v1037_v40 = vsel %vm1034_vm9, %v1036_v37, %v1032_v38 }
 0xa3b   : > { %v1038_v41 = vmul.f32 %v1037_v40, %v1005_v14 }
 0xa3d   : > { %v1040_v43 = vmul.f32 %v1039_v39, %v1038_v41 }
 0xa3f   : > { %v1042_v44 = vadd.f32 %v1041_v42, %v1040_v43 }
 0xa41   : > { %v1043_v45 = vpack.c.bf16 %v1042_v44, %v1042_v44 }
 0xa43   : > { %1320 = vmatmul.msk.bf16.vlgmr.msra.gmra.mxu0 %vm426_vm1, %v1043_v45 }
 0xac0   : > { %v1072_v46 = vpop.f32.mrf.mxu0 }
 0xac1   : > { %1076 = vst [vmem:[%s381_s0] sm:$0xff] %v1072_v46 }
 0xac8   : > { %v1074_v48 = vpop.f32.mrf.mxu0 }
 0xac9 PF: > { %s1322_s10 = sshll.u32 %s1546_s9, 3  ;;  %s1090_s21 = sshll.u32 %s381_s0, 4  ;;  %s1091_s21 = int_to_ptr.vmem [resolvable:$true] %s1090_s21 }
 0xaca   : > { %s1088_s18 = scalar_lea.hbm %s1883_s8, %s1322_s10  ;;  %s1906_s25 = sand.u32 1, %s1534_s28  }
 0xacb   : > { %s1092_s22 = sshll.u32 %s1088_s18, 4  ;;  %s1078_s19 = scalar_lea.sflag [#allocation4], %s1906_s25  ;;  %s1093_s22 = int_to_ptr.hbm [resolvable:$true] %s1092_s22 }
 0xacc   : > { %s1478_s13 = sshra.s32 %s1093_s22, 4  ;;  %s1484_s16 = scalar_lea.hbm %s1883_s8, 16  ;;  %s1479_s13 = int_to_ptr.hbm [resolvable:$true] %s1478_s13 }
 0xacd   : > { %s1480_s14 = scalar_lea.hbm %s1479_s13, 8  ;;  %p1485_p6 = scmp.lt.s32.totalorder %s1479_s13, %s1883_s8 }
 0xace   : > { %p1481_p2 = scmp.ne.s32.totalorder %s1479_s13, %s1480_s14  ;;  %p1486_p7 = scmp.lt.s32.totalorder %s1484_s16, %s1480_s14 }
 0xad0   : > { %p1482_p4 = pnand %p1481_p2, %p1670_p3  ;;  %p1487_p8 = por %p1486_p7, %p1485_p6 }
 0xad2   : > { %p1483_p5 = pneg %p1482_p4 }
 0xad4   : > { %p1488_p10 = pnand %p1487_p8, %p1483_p5 }
 0xad6   : > { %1491 = shalt.err (!%p1488_p10)
}
 0xad7   : > { %1345 = dma.vmem_to_hbm [thread:$0]  (%p1670_p3), %s1091_s21, 128, %s1093_s22, %s1078_s19  }
 0xad8 PF: > { %s1907_s0 = sld [smem:[#allocation10_spill]] }
 0xad9   : > { %s1908_s23 = sld [smem:[#allocation6_spill]] }
 0xade   : > { %p1351_p11 = scmp.ge.s32.totalorder %s1907_s0, 2 }
 0xadf   : > { %s1104_s27 = sand.u32 1, %s1908_s23  }
 0xae0   : > { %p1348_p12 = pnand %p1351_p11, %p1680_p9  ;;  %s1105_s30 = scalar_lea.sflag [#allocation4], %s1104_s27 }
 0xae2   : > { %p1349_p13 = pneg %p1348_p12 }
 0xae4   : > { %1525 = dma.done.wait (%p1349_p13), %s1105_s30, 128  }
 0xae5   : > { %1527 = vsyncadd (%p1349_p13), %s1105_s30, 4294967168  ;;  %s21_s12 = sadd.s32 1, %s1907_s0   ;;  %s1910_s29 = sld [smem:[#allocation7_spill]] }
 0xae6   : > { %p18_p0 = scmp.ge.s32.totalorder %s21_s12, 6   ;;  %s1911_s10 = sld [smem:[#allocation14_spill]] }
 0xae7   : > { %s1912_s30 = sld [smem:[#allocation8_spill]]  ;;  %s1916_s27 = smov %s1534_s28 }
 0xae8   : > { %s1913_s9 = sld [smem:[#allocation9_spill]] }
 0xae9   : > { %s1914_s17 = sld [smem:[#allocation11_spill]] }
 0xaea   : > { %s1915_s11 = sld [smem:[#allocation12_spill]] }
 0xaeb   : > { %s1917_s28 = smov %s1910_s29  ;;  %20 = sbr.rel (!%p18_p0) target bundleno = 7 (0x7), region = 110 }
 0xaec   : > { %s1918_s29 = smov %s1911_s10 }
 0xaef   : > { %s1919_s10 = smov %s1914_s17 }
 0xaf0   :  { %1111 = vsyncpa [#allocation4], 1 }
 0xaf1   :  { %1113 = vsyncpa [#allocation4 + $0x1], 1 }

</bundles_post_ra>
